<compile_context>
chip_gen: v6e
topology: v6e:2x2x1
jax: 0.10.0
libtpu: 0.0.40
codegen_flags: <defaults>
</compile_context>

<pallas_src>
import functools
import numpy as np
import jax
import jax.numpy as jnp
from jax import lax
from jax.experimental import pallas as pl
from jax.experimental.pallas import tpu as pltpu

# ---- synthetic cfg.TRAIN constants (deterministic, in-script) ----
FG_THRESH = 0.5
BG_THRESH_HI = 0.5
BG_THRESH_LO = 0.0
TRAIN_BATCH_SIZE = 16          # rois_per_image
FG_FRACTION = 0.25
BBOX_NORMALIZE_TARGETS_PRECOMPUTED = True
BBOX_NORMALIZE_MEANS = np.zeros((6,), np.float32)
BBOX_NORMALIZE_STDS = np.array([0.1, 0.1, 0.2, 0.2, 0.1, 0.2], np.float32)
BBOX_INSIDE_WEIGHTS = np.ones((6,), np.float32)


# -------------------- kernel 1: 3D overlaps + max/argmax --------------------
# rois_ref: (B, 7, N)  rows = (batch_idx, x1, y1, x2, y2, z1, z2), N on lanes
# gt_ref:   (B, K, 7)  cols = (x1, y1, x2, y2, z1, z2, cls), K on sublanes
# outputs:  maxov (B, 1, N) f32, assign (B, 1, N) i32
def _overlaps_kernel(rois_ref, gt_ref, maxov_ref, assign_ref):
    rois = rois_ref[...]
    gts = gt_ref[...]
    K = gts.shape[1]

    # proposal coordinates: sublane selects -> (B, 1, N) full-lane rows
    bx1 = rois[:, 1:2, :]
    by1 = rois[:, 2:3, :]
    bx2 = rois[:, 3:4, :]
    by2 = rois[:, 4:5, :]
    bz1 = rois[:, 5:6, :]
    bz2 = rois[:, 6:7, :]

    # gt coordinates: single-lane selects on a tiny (B, K, 7) slab -> (B, K, 1)
    gx1 = gts[:, :, 0:1]
    gy1 = gts[:, :, 1:2]
    gx2 = gts[:, :, 2:3]
    gy2 = gts[:, :, 3:4]
    gz1 = gts[:, :, 4:5]
    gz2 = gts[:, :, 5:6]

    bw = bx2 - bx1 + 1.0          # (B, 1, N)
    bh = by2 - by1 + 1.0
    bd = bz2 - bz1 + 1.0
    gw = gx2 - gx1 + 1.0          # (B, K, 1)
    gh = gy2 - gy1 + 1.0
    gd = gz2 - gz1 + 1.0

    b_vol = bw * bh * bd          # (B, 1, N)
    g_vol = gw * gh * gd          # (B, K, 1)
    b_zero = (bw == 1.0) & (bh == 1.0) & (bd == 1.0)   # (B, 1, N)
    g_zero = (gw == 1.0) & (gh == 1.0) & (gd == 1.0)   # (B, K, 1)

    # pairwise intersection, full (B, K, N) VPU work
    iw = jnp.maximum(jnp.minimum(bx2, gx2) - jnp.maximum(bx1, gx1) + 1.0, 0.0)
    ih = jnp.maximum(jnp.minimum(by2, gy2) - jnp.maximum(by1, gy1) + 1.0, 0.0)
    idp = jnp.maximum(jnp.minimum(bz2, gz2) - jnp.maximum(bz1, gz1) + 1.0, 0.0)

    inter = iw * ih * idp                     # (B, K, N)
    ua = b_vol + g_vol - inter
    ov = inter / ua
    ov = jnp.where(g_zero, 0.0, ov)
    ov = jnp.where(b_zero, -1.0, ov)

    # unrolled running max/argmax over the K sublanes (K is a small constant);
    # strict '>' keeps first-occurrence (lowest GT index) tie-break.
    best_v = ov[:, 0:1, :]                            # (B, 1, N)
    best_i = jnp.zeros(best_v.shape, jnp.int32)
    for k in range(1, K):
        v = ov[:, k:k + 1, :]
        better = v > best_v
        best_v = jnp.where(better, v, best_v)
        best_i = jnp.where(better, k, best_i)

    maxov_ref[...] = best_v
    assign_ref[...] = best_i


def compute_overlaps(all_rois, gt_boxes):
    """all_rois (B, N, 7), gt_boxes (B, K, 7) -> max_overlaps (B, N), assign (B, N)."""
    B, N, _ = all_rois.shape
    K = gt_boxes.shape[1]
    rois_t = jnp.transpose(all_rois, (0, 2, 1))       # (B, 7, N): N on lanes

    maxov, assign = pl.pallas_call(
        _overlaps_kernel,
        out_shape=(jax.ShapeDtypeStruct((B, 1, N), jnp.float32),
                   jax.ShapeDtypeStruct((B, 1, N), jnp.int32)),
        grid=(1,),   # single grid step: whole problem fits trivially in VMEM
        in_specs=[pl.BlockSpec((B, 7, N), lambda i: (0, 0, 0)),
                  pl.BlockSpec((B, K, 7), lambda i: (0, 0, 0))],
        out_specs=(pl.BlockSpec((B, 1, N), lambda i: (0, 0, 0)),
                   pl.BlockSpec((B, 1, N), lambda i: (0, 0, 0))),
        compiler_params=pltpu.CompilerParams(dimension_semantics=("arbitrary",)),
    )(rois_t, gt_boxes)
    return maxov[:, 0, :], assign[:, 0, :]


# ------------- kernel 2: bbox_transform + normalize + expansion -------------
# ex_ref / gt_ref: (B, 6, R)  rows = (x1, y1, x2, y2, z1, z2), R on lanes
# lab_ref:         (B, 1, R)
# outputs: tgt / inw / outw all (B, 6, R); channel order (tx, ty, tw, th, tz, td)
def _targets_kernel(ex_ref, gt_ref, lab_ref, tgt_ref, inw_ref, outw_ref):
    ex = ex_ref[...]
    gt = gt_ref[...]
    lab = lab_ref[...]                                # (B, 1, R)

    ex1 = ex[:, 0:1, :]; ey1 = ex[:, 1:2, :]
    ex2 = ex[:, 2:3, :]; ey2 = ex[:, 3:4, :]
    ez1 = ex[:, 4:5, :]; ez2 = ex[:, 5:6, :]
    gx1 = gt[:, 0:1, :]; gy1 = gt[:, 1:2, :]
    gx2 = gt[:, 2:3, :]; gy2 = gt[:, 3:4, :]
    gz1 = gt[:, 4:5, :]; gz2 = gt[:, 5:6, :]

    ew = ex2 - ex1 + 1.0
    eh = ey2 - ey1 + 1.0
    ed = ez2 - ez1 + 1.0
    ecx = ex1 + 0.5 * ew
    ecy = ey1 + 0.5 * eh
    ecz = ez1 + 0.5 * ed

    gw = gx2 - gx1 + 1.0
    gh = gy2 - gy1 + 1.0
    gd = gz2 - gz1 + 1.0
    gcx = gx1 + 0.5 * gw
    gcy = gy1 + 0.5 * gh
    gcz = gz1 + 0.5 * gd

    tx = (gcx - ecx) / ew
    ty = (gcy - ecy) / eh
    tw = jnp.log(gw / ew)
    th = jnp.log(gh / eh)
    tz = (gcz - ecz) / ed
    td = jnp.log(gd / ed)
    rows = [tx, ty, tw, th, tz, td]                   # each (B, 1, R)

    if BBOX_NORMALIZE_TARGETS_PRECOMPUTED:
        # means/stds baked in as Python floats (means are zero -> pure scale)
        rows = [(r - float(BBOX_NORMALIZE_MEANS[c]))
                * float(1.0 / BBOX_NORMALIZE_STDS[c])
                for c, r in enumerate(rows)]

    fg = lab > 0.0                                    # (B, 1, R)
    tgt_rows = [jnp.where(fg, r, 0.0) for r in rows]
    inw_rows = [jnp.where(fg, float(BBOX_INSIDE_WEIGHTS[c]), 0.0)
                for c in range(6)]
    outw_rows = [jnp.where(fg, 1.0 if float(BBOX_INSIDE_WEIGHTS[c]) > 0.0 else 0.0, 0.0)
                 for c in range(6)]

    # sublane-axis stacking (near-free), single lane-dense store per output
    tgt_ref[...] = jnp.concatenate(tgt_rows, axis=1)
    inw_ref[...] = jnp.concatenate(inw_rows, axis=1)
    outw_ref[...] = jnp.concatenate(outw_rows, axis=1)


def compute_bbox_targets(ex_rois, gt_rois, labels):
    """ex_rois/gt_rois (B, R, 6), labels (B, R) -> three (B, R, 6) arrays."""
    B, R, _ = ex_rois.shape
    ex_t = jnp.transpose(ex_rois, (0, 2, 1))          # (B, 6, R): R on lanes
    gt_t = jnp.transpose(gt_rois, (0, 2, 1))
    lab = labels.reshape(B, 1, R).astype(jnp.float32)

    spec_b6R = pl.BlockSpec((B, 6, R), lambda i: (0, 0, 0))
    spec_b1R = pl.BlockSpec((B, 1, R), lambda i: (0, 0, 0))
    tgt_t, inw_t, outw_t = pl.pallas_call(
        _targets_kernel,
        out_shape=(jax.ShapeDtypeStruct((B, 6, R), jnp.float32),
                   jax.ShapeDtypeStruct((B, 6, R), jnp.float32),
                   jax.ShapeDtypeStruct((B, 6, R), jnp.float32)),
        grid=(1,),
        in_specs=[spec_b6R, spec_b6R, spec_b1R],
        out_specs=(spec_b6R, spec_b6R, spec_b6R),
        compiler_params=pltpu.CompilerParams(dimension_semantics=("arbitrary",)),
    )(ex_t, gt_t, lab)

    to_brc = lambda x: jnp.transpose(x, (0, 2, 1))    # back to module layout (B, R, 6)
    return to_brc(tgt_t), to_brc(inw_t), to_brc(outw_t)


# -------------------- glue: FG/BG sampling (plain JAX) --------------------
def _sample_rois_one(key, b_idx, max_ov, labels_all, rois_all, gt_boxes_b,
                     gt_assign, *, rois_per_image, fg_rois_per_image):
    N = max_ov.shape[0]
    R = rois_per_image
    fg_mask = max_ov >= FG_THRESH
    bg_mask = (max_ov < BG_THRESH_HI) & (max_ov >= BG_THRESH_LO)
    fg_num = jnp.sum(fg_mask.astype(jnp.int32))
    bg_num = jnp.sum(bg_mask.astype(jnp.int32))

    k1, k2, k3 = jax.random.split(key, 3)
    fg_score = jnp.where(fg_mask, jax.random.uniform(k1, (N,)), 2.0)
    fg_perm = jnp.argsort(fg_score)                      # fg indices (random order) first
    bg_sorted = jnp.argsort((~bg_mask).astype(jnp.int32))  # bg indices (ascending) first

    j = jnp.arange(R)
    both = (fg_num > 0) & (bg_num > 0)
    fg_only = (fg_num > 0) & (bg_num == 0)
    # TODO(synk): original raises ValueError when fg_num == 0 and bg_num == 0;
    # no runtime exception inside traced JAX — that case silently yields bg-only.
    fg_this = jnp.where(both, jnp.minimum(fg_rois_per_image, fg_num),
                        jnp.where(fg_only, R, 0))

    u_fg = jax.random.uniform(k2, (R,))
    u_bg = jax.random.uniform(k3, (R,))
    fg_rep = fg_perm[jnp.clip(jnp.floor(u_fg * fg_num.astype(jnp.float32)).astype(jnp.int32), 0, N - 1)]
    fg_pick = jnp.where(fg_only, fg_rep, fg_perm[jnp.clip(j, 0, N - 1)])
    # TODO(synk): BG sampling is with replacement; the reference samples without
    # replacement when bg_num >= needed (distributionally different).
    bg_pick = bg_sorted[jnp.clip(jnp.floor(u_bg * bg_num.astype(jnp.float32)).astype(jnp.int32), 0, N - 1)]
    keep = jnp.where(j < fg_this, fg_pick, bg_pick)

    lab_keep = labels_all[keep]
    lab_keep = jnp.where(j < fg_this, lab_keep, 0.0)     # zero out background labels
    rois_keep = rois_all[keep]
    rois_keep = rois_keep.at[:, 0].set(b_idx.astype(rois_keep.dtype))
    gt_keep = gt_boxes_b[gt_assign[keep]]
    return lab_keep, rois_keep, gt_keep


# -------------------- forward (== _ProposalTargetLayer.forward) --------------------
def proposal_target_layer_forward(all_rois, gt_boxes, num_boxes, num_classes, key):
    # num_boxes is accepted for signature parity but (as in the reference
    # forward) is not used.
    del num_boxes
    B = gt_boxes.shape[0]

    gt_append = jnp.zeros_like(gt_boxes)
    gt_append = gt_append.at[:, :, 1:7].set(gt_boxes[:, :, :6])
    all_rois = jnp.concatenate([all_rois, gt_append], axis=1)

    num_images = 1
    rois_per_image = int(TRAIN_BATCH_SIZE / num_images)
    fg_rois_per_image = int(np.round(FG_FRACTION * rois_per_image))
    fg_rois_per_image = 1 if fg_rois_per_image == 0 else fg_rois_per_image

    max_ov, gt_assign = compute_overlaps(all_rois, gt_boxes)        # (B, N)
    labels_all = jnp.take_along_axis(gt_boxes[:, :, 6], gt_assign, axis=1)

    keys = jax.random.split(key, B)
    sample = functools.partial(_sample_rois_one,
                               rois_per_image=rois_per_image,
                               fg_rois_per_image=fg_rois_per_image)
    labels_batch, rois_batch, gt_rois_batch = jax.vmap(sample)(
        keys, jnp.arange(B), max_ov, labels_all, all_rois, gt_boxes, gt_assign)

    bbox_targets, bbox_inside_weights, bbox_outside_weights = compute_bbox_targets(
        rois_batch[:, :, 1:7], gt_rois_batch[:, :, :6], labels_batch)

    return (rois_batch, labels_batch, bbox_targets,
            bbox_inside_weights, bbox_outside_weights)


if __name__ == "__main__":
    key = jax.random.PRNGKey(0)
    B, P, K = 2, 20, 4            # batch, proposals, gt boxes per image
    num_classes = 5
    k1, k2, k3, k4, k5 = jax.random.split(key, 5)

    # proposals: (batch_idx, x1, y1, x2, y2, z1, z2)
    xyz1 = jax.random.uniform(k1, (B, P, 3), minval=0.0, maxval=40.0)
    sz = jax.random.uniform(k2, (B, P, 3), minval=4.0, maxval=20.0)
    rois_boxes = jnp.concatenate(
        [xyz1[..., 0:1], xyz1[..., 1:2],
         xyz1[..., 0:1] + sz[..., 0:1], xyz1[..., 1:2] + sz[..., 1:2],
         xyz1[..., 2:3], xyz1[..., 2:3] + sz[..., 2:3]], axis=-1)
    batch_col = jnp.broadcast_to(
        jnp.arange(B, dtype=jnp.float32)[:, None, None], (B, P, 1))
    all_rois = jnp.concatenate([batch_col, rois_boxes], axis=-1)     # (2, 20, 7)

    # gt boxes: (x1, y1, x2, y2, z1, z2, class)
    gxyz1 = jax.random.uniform(k3, (B, K, 3), minval=0.0, maxval=40.0)
    gsz = jax.random.uniform(k4, (B, K, 3), minval=6.0, maxval=24.0)
    gt_box = jnp.concatenate(
        [gxyz1[..., 0:1], gxyz1[..., 1:2],
         gxyz1[..., 0:1] + gsz[..., 0:1], gxyz1[..., 1:2] + gsz[..., 1:2],
         gxyz1[..., 2:3], gxyz1[..., 2:3] + gsz[..., 2:3]], axis=-1)
    gt_cls = jax.random.randint(k5, (B, K, 1), 1, num_classes).astype(jnp.float32)
    gt_boxes = jnp.concatenate([gt_box, gt_cls], axis=-1)            # (2, 4, 7)
    num_boxes = jnp.full((B,), K, dtype=jnp.int32)

    outs = proposal_target_layer_forward(all_rois, gt_boxes, num_boxes,
                                         num_classes, jax.random.PRNGKey(7))
    outs = jax.block_until_ready(outs)
    rois, labels, tgts, inw, outw = outs
    assert rois.shape == (B, TRAIN_BATCH_SIZE, 7)
    assert labels.shape == (B, TRAIN_BATCH_SIZE)
    assert tgts.shape == (B, TRAIN_BATCH_SIZE, 6)
    assert inw.shape == (B, TRAIN_BATCH_SIZE, 6)
    assert outw.shape == (B, TRAIN_BATCH_SIZE, 6)
    print("KERNEL_OK")
</pallas_src>

<mosaic_0001>
module attributes {stable_mosaic.version = 11 : i64} {
  func.func @_overlaps_kernel(%arg0: i32, %arg1: memref<2x7x24xf32, #tpu.memory_space<vmem>>, %arg2: memref<2x4x7xf32, #tpu.memory_space<vmem>>, %arg3: memref<2x1x24xf32, #tpu.memory_space<vmem>>, %arg4: memref<2x1x24xi32, #tpu.memory_space<vmem>>) attributes {dimension_semantics = [#tpu.dimension_semantics<arbitrary>], iteration_bounds = array<i64: 1>, scalar_prefetch = 0 : i64, scratch_operands = 0 : i64, tpu.core_type = #tpu.core_type<tc>, window_params = [{pipeline_mode = #tpu.pipeline_mode<synchronous>, transform_indices = @transform_0, window_bounds = array<i64: 2, 7, 24>}, {pipeline_mode = #tpu.pipeline_mode<synchronous>, transform_indices = @transform_1, window_bounds = array<i64: 2, 4, 7>}, {pipeline_mode = #tpu.pipeline_mode<synchronous>, transform_indices = @transform_2, window_bounds = array<i64: 2, 1, 24>}, {pipeline_mode = #tpu.pipeline_mode<synchronous>, transform_indices = @transform_3, window_bounds = array<i64: 2, 1, 24>}]} {
    %c0 = arith.constant 0 : index
    %c0_0 = arith.constant 0 : index
    %c0_1 = arith.constant 0 : index
    %0 = vector.load %arg1[%c0, %c0_0, %c0_1] : memref<2x7x24xf32, #tpu.memory_space<vmem>>, vector<2x7x24xf32>
    %c0_2 = arith.constant 0 : index
    %c0_3 = arith.constant 0 : index
    %c0_4 = arith.constant 0 : index
    %1 = vector.load %arg2[%c0_2, %c0_3, %c0_4] : memref<2x4x7xf32, #tpu.memory_space<vmem>>, vector<2x4x7xf32>
    %2 = vector.extract_strided_slice %0 {offsets = [0, 1, 0], sizes = [2, 1, 24], strides = [1, 1, 1]} : vector<2x7x24xf32> to vector<2x1x24xf32>
    %3 = vector.extract_strided_slice %0 {offsets = [0, 2, 0], sizes = [2, 1, 24], strides = [1, 1, 1]} : vector<2x7x24xf32> to vector<2x1x24xf32>
    %4 = vector.extract_strided_slice %0 {offsets = [0, 3, 0], sizes = [2, 1, 24], strides = [1, 1, 1]} : vector<2x7x24xf32> to vector<2x1x24xf32>
    %5 = vector.extract_strided_slice %0 {offsets = [0, 4, 0], sizes = [2, 1, 24], strides = [1, 1, 1]} : vector<2x7x24xf32> to vector<2x1x24xf32>
    %6 = vector.extract_strided_slice %0 {offsets = [0, 5, 0], sizes = [2, 1, 24], strides = [1, 1, 1]} : vector<2x7x24xf32> to vector<2x1x24xf32>
    %7 = vector.extract_strided_slice %0 {offsets = [0, 6, 0], sizes = [2, 1, 24], strides = [1, 1, 1]} : vector<2x7x24xf32> to vector<2x1x24xf32>
    %8 = vector.extract_strided_slice %1 {offsets = [0, 0, 0], sizes = [2, 4, 1], strides = [1, 1, 1]} : vector<2x4x7xf32> to vector<2x4x1xf32>
    %9 = vector.extract_strided_slice %1 {offsets = [0, 0, 1], sizes = [2, 4, 1], strides = [1, 1, 1]} : vector<2x4x7xf32> to vector<2x4x1xf32>
    %10 = vector.extract_strided_slice %1 {offsets = [0, 0, 2], sizes = [2, 4, 1], strides = [1, 1, 1]} : vector<2x4x7xf32> to vector<2x4x1xf32>
    %11 = vector.extract_strided_slice %1 {offsets = [0, 0, 3], sizes = [2, 4, 1], strides = [1, 1, 1]} : vector<2x4x7xf32> to vector<2x4x1xf32>
    %12 = vector.extract_strided_slice %1 {offsets = [0, 0, 4], sizes = [2, 4, 1], strides = [1, 1, 1]} : vector<2x4x7xf32> to vector<2x4x1xf32>
    %13 = vector.extract_strided_slice %1 {offsets = [0, 0, 5], sizes = [2, 4, 1], strides = [1, 1, 1]} : vector<2x4x7xf32> to vector<2x4x1xf32>
    %14 = arith.subf %4, %2 : vector<2x1x24xf32>
    %cst = arith.constant 1.000000e+00 : f32
    %15 = vector.broadcast %cst : f32 to vector<2x1x24xf32>
    %16 = arith.addf %14, %15 : vector<2x1x24xf32>
    %17 = arith.subf %5, %3 : vector<2x1x24xf32>
    %cst_5 = arith.constant 1.000000e+00 : f32
    %18 = vector.broadcast %cst_5 : f32 to vector<2x1x24xf32>
    %19 = arith.addf %17, %18 : vector<2x1x24xf32>
    %20 = arith.subf %7, %6 : vector<2x1x24xf32>
    %cst_6 = arith.constant 1.000000e+00 : f32
    %21 = vector.broadcast %cst_6 : f32 to vector<2x1x24xf32>
    %22 = arith.addf %20, %21 : vector<2x1x24xf32>
    %23 = arith.subf %10, %8 : vector<2x4x1xf32>
    %cst_7 = arith.constant 1.000000e+00 : f32
    %24 = vector.broadcast %cst_7 : f32 to vector<2x4x1xf32>
    %25 = arith.addf %23, %24 : vector<2x4x1xf32>
    %26 = arith.subf %11, %9 : vector<2x4x1xf32>
    %cst_8 = arith.constant 1.000000e+00 : f32
    %27 = vector.broadcast %cst_8 : f32 to vector<2x4x1xf32>
    %28 = arith.addf %26, %27 : vector<2x4x1xf32>
    %29 = arith.subf %13, %12 : vector<2x4x1xf32>
    %cst_9 = arith.constant 1.000000e+00 : f32
    %30 = vector.broadcast %cst_9 : f32 to vector<2x4x1xf32>
    %31 = arith.addf %29, %30 : vector<2x4x1xf32>
    %32 = arith.mulf %16, %19 : vector<2x1x24xf32>
    %33 = arith.mulf %32, %22 : vector<2x1x24xf32>
    %34 = arith.mulf %25, %28 : vector<2x4x1xf32>
    %35 = arith.mulf %34, %31 : vector<2x4x1xf32>
    %cst_10 = arith.constant 1.000000e+00 : f32
    %36 = vector.broadcast %cst_10 : f32 to vector<2x1x24xf32>
    %37 = arith.cmpf oeq, %16, %36 : vector<2x1x24xf32>
    %cst_11 = arith.constant 1.000000e+00 : f32
    %38 = vector.broadcast %cst_11 : f32 to vector<2x1x24xf32>
    %39 = arith.cmpf oeq, %19, %38 : vector<2x1x24xf32>
    %40 = arith.andi %37, %39 : vector<2x1x24xi1>
    %cst_12 = arith.constant 1.000000e+00 : f32
    %41 = vector.broadcast %cst_12 : f32 to vector<2x1x24xf32>
    %42 = arith.cmpf oeq, %22, %41 : vector<2x1x24xf32>
    %43 = arith.andi %40, %42 : vector<2x1x24xi1>
    %cst_13 = arith.constant 1.000000e+00 : f32
    %44 = vector.broadcast %cst_13 : f32 to vector<2x4x1xf32>
    %45 = arith.cmpf oeq, %25, %44 : vector<2x4x1xf32>
    %cst_14 = arith.constant 1.000000e+00 : f32
    %46 = vector.broadcast %cst_14 : f32 to vector<2x4x1xf32>
    %47 = arith.cmpf oeq, %28, %46 : vector<2x4x1xf32>
    %48 = arith.andi %45, %47 : vector<2x4x1xi1>
    %cst_15 = arith.constant 1.000000e+00 : f32
    %49 = vector.broadcast %cst_15 : f32 to vector<2x4x1xf32>
    %50 = arith.cmpf oeq, %31, %49 : vector<2x4x1xf32>
    %51 = arith.andi %48, %50 : vector<2x4x1xi1>
    %52 = vector.broadcast %4 : vector<2x1x24xf32> to vector<2x4x24xf32>
    %53 = vector.broadcast %10 : vector<2x4x1xf32> to vector<2x4x24xf32>
    %54 = arith.minimumf %52, %53 : vector<2x4x24xf32>
    %55 = vector.broadcast %2 : vector<2x1x24xf32> to vector<2x4x24xf32>
    %56 = vector.broadcast %8 : vector<2x4x1xf32> to vector<2x4x24xf32>
    %57 = arith.maximumf %55, %56 : vector<2x4x24xf32>
    %58 = arith.subf %54, %57 : vector<2x4x24xf32>
    %cst_16 = arith.constant 1.000000e+00 : f32
    %59 = vector.broadcast %cst_16 : f32 to vector<2x4x24xf32>
    %60 = arith.addf %58, %59 : vector<2x4x24xf32>
    %cst_17 = arith.constant 0.000000e+00 : f32
    %61 = vector.broadcast %cst_17 : f32 to vector<2x4x24xf32>
    %62 = arith.maximumf %60, %61 : vector<2x4x24xf32>
    %63 = vector.broadcast %5 : vector<2x1x24xf32> to vector<2x4x24xf32>
    %64 = vector.broadcast %11 : vector<2x4x1xf32> to vector<2x4x24xf32>
    %65 = arith.minimumf %63, %64 : vector<2x4x24xf32>
    %66 = vector.broadcast %3 : vector<2x1x24xf32> to vector<2x4x24xf32>
    %67 = vector.broadcast %9 : vector<2x4x1xf32> to vector<2x4x24xf32>
    %68 = arith.maximumf %66, %67 : vector<2x4x24xf32>
    %69 = arith.subf %65, %68 : vector<2x4x24xf32>
    %cst_18 = arith.constant 1.000000e+00 : f32
    %70 = vector.broadcast %cst_18 : f32 to vector<2x4x24xf32>
    %71 = arith.addf %69, %70 : vector<2x4x24xf32>
    %cst_19 = arith.constant 0.000000e+00 : f32
    %72 = vector.broadcast %cst_19 : f32 to vector<2x4x24xf32>
    %73 = arith.maximumf %71, %72 : vector<2x4x24xf32>
    %74 = vector.broadcast %7 : vector<2x1x24xf32> to vector<2x4x24xf32>
    %75 = vector.broadcast %13 : vector<2x4x1xf32> to vector<2x4x24xf32>
    %76 = arith.minimumf %74, %75 : vector<2x4x24xf32>
    %77 = vector.broadcast %6 : vector<2x1x24xf32> to vector<2x4x24xf32>
    %78 = vector.broadcast %12 : vector<2x4x1xf32> to vector<2x4x24xf32>
    %79 = arith.maximumf %77, %78 : vector<2x4x24xf32>
    %80 = arith.subf %76, %79 : vector<2x4x24xf32>
    %cst_20 = arith.constant 1.000000e+00 : f32
    %81 = vector.broadcast %cst_20 : f32 to vector<2x4x24xf32>
    %82 = arith.addf %80, %81 : vector<2x4x24xf32>
    %cst_21 = arith.constant 0.000000e+00 : f32
    %83 = vector.broadcast %cst_21 : f32 to vector<2x4x24xf32>
    %84 = arith.maximumf %82, %83 : vector<2x4x24xf32>
    %85 = arith.mulf %62, %73 : vector<2x4x24xf32>
    %86 = arith.mulf %85, %84 : vector<2x4x24xf32>
    %87 = vector.broadcast %33 : vector<2x1x24xf32> to vector<2x4x24xf32>
    %88 = vector.broadcast %35 : vector<2x4x1xf32> to vector<2x4x24xf32>
    %89 = arith.addf %87, %88 : vector<2x4x24xf32>
    %90 = arith.subf %89, %86 : vector<2x4x24xf32>
    %91 = arith.divf %86, %90 : vector<2x4x24xf32>
    %cst_22 = arith.constant 0.000000e+00 : f32
    %92 = vector.shape_cast %51 : vector<2x4x1xi1> to vector<2x4x1xi1>
    %93 = vector.broadcast %92 : vector<2x4x1xi1> to vector<2x4x24xi1>
    %94 = vector.broadcast %cst_22 : f32 to vector<2x4x24xf32>
    %95 = arith.select %93, %94, %91 : vector<2x4x24xi1>, vector<2x4x24xf32>
    %cst_23 = arith.constant -1.000000e+00 : f32
    %96 = vector.shape_cast %43 : vector<2x1x24xi1> to vector<2x1x24xi1>
    %97 = vector.broadcast %96 : vector<2x1x24xi1> to vector<2x4x24xi1>
    %98 = vector.broadcast %cst_23 : f32 to vector<2x4x24xf32>
    %99 = arith.select %97, %98, %95 : vector<2x4x24xi1>, vector<2x4x24xf32>
    %100 = vector.extract_strided_slice %99 {offsets = [0, 0, 0], sizes = [2, 1, 24], strides = [1, 1, 1]} : vector<2x4x24xf32> to vector<2x1x24xf32>
    %c0_i32 = arith.constant 0 : i32
    %101 = vector.broadcast %c0_i32 : i32 to vector<2x1x24xi32>
    %102 = vector.extract_strided_slice %99 {offsets = [0, 1, 0], sizes = [2, 1, 24], strides = [1, 1, 1]} : vector<2x4x24xf32> to vector<2x1x24xf32>
    %103 = arith.cmpf ogt, %102, %100 : vector<2x1x24xf32>
    %104 = arith.select %103, %102, %100 : vector<2x1x24xi1>, vector<2x1x24xf32>
    %c1_i32 = arith.constant 1 : i32
    %105 = vector.broadcast %c1_i32 : i32 to vector<2x1x24xi32>
    %106 = arith.select %103, %105, %101 : vector<2x1x24xi1>, vector<2x1x24xi32>
    %107 = vector.extract_strided_slice %99 {offsets = [0, 2, 0], sizes = [2, 1, 24], strides = [1, 1, 1]} : vector<2x4x24xf32> to vector<2x1x24xf32>
    %108 = arith.cmpf ogt, %107, %104 : vector<2x1x24xf32>
    %109 = arith.select %108, %107, %104 : vector<2x1x24xi1>, vector<2x1x24xf32>
    %c2_i32 = arith.constant 2 : i32
    %110 = vector.broadcast %c2_i32 : i32 to vector<2x1x24xi32>
    %111 = arith.select %108, %110, %106 : vector<2x1x24xi1>, vector<2x1x24xi32>
    %112 = vector.extract_strided_slice %99 {offsets = [0, 3, 0], sizes = [2, 1, 24], strides = [1, 1, 1]} : vector<2x4x24xf32> to vector<2x1x24xf32>
    %113 = arith.cmpf ogt, %112, %109 : vector<2x1x24xf32>
    %114 = arith.select %113, %112, %109 : vector<2x1x24xi1>, vector<2x1x24xf32>
    %c3_i32 = arith.constant 3 : i32
    %115 = vector.broadcast %c3_i32 : i32 to vector<2x1x24xi32>
    %116 = arith.select %113, %115, %111 : vector<2x1x24xi1>, vector<2x1x24xi32>
    %c0_24 = arith.constant 0 : index
    %c0_25 = arith.constant 0 : index
    %c0_26 = arith.constant 0 : index
    %117 = vector.load %arg3[%c0_24, %c0_25, %c0_26] : memref<2x1x24xf32, #tpu.memory_space<vmem>>, vector<2x1x24xf32>
    tpu.vector_store %arg3[%c0_24, %c0_25, %c0_26], %114 {strides = array<i32>} : memref<2x1x24xf32, #tpu.memory_space<vmem>>, vector<2x1x24xf32>,
    %c0_27 = arith.constant 0 : index
    %c0_28 = arith.constant 0 : index
    %c0_29 = arith.constant 0 : index
    %118 = vector.load %arg4[%c0_27, %c0_28, %c0_29] : memref<2x1x24xi32, #tpu.memory_space<vmem>>, vector<2x1x24xi32>
    tpu.vector_store %arg4[%c0_27, %c0_28, %c0_29], %116 {strides = array<i32>} : memref<2x1x24xi32, #tpu.memory_space<vmem>>, vector<2x1x24xi32>,
    return
  }
  func.func @transform_0(%arg0: i32) -> (i32, i32, i32) {
    %c0_i32 = arith.constant 0 : i32
    %c0_i32_0 = arith.constant 0 : i32
    %c0_i32_1 = arith.constant 0 : i32
    %c0_i32_2 = arith.constant 0 : i32
    return %c0_i32, %c0_i32_0, %c0_i32_1 : i32, i32, i32
  }
  func.func @transform_1(%arg0: i32) -> (i32, i32, i32) {
    %c0_i32 = arith.constant 0 : i32
    %c0_i32_0 = arith.constant 0 : i32
    %c0_i32_1 = arith.constant 0 : i32
    %c0_i32_2 = arith.constant 0 : i32
    return %c0_i32, %c0_i32_0, %c0_i32_1 : i32, i32, i32
  }
  func.func @transform_2(%arg0: i32) -> (i32, i32, i32) {
    %c0_i32 = arith.constant 0 : i32
    %c0_i32_0 = arith.constant 0 : i32
    %c0_i32_1 = arith.constant 0 : i32
    %c0_i32_2 = arith.constant 0 : i32
    return %c0_i32, %c0_i32_0, %c0_i32_1 : i32, i32, i32
  }
  func.func @transform_3(%arg0: i32) -> (i32, i32, i32) {
    %c0_i32 = arith.constant 0 : i32
    %c0_i32_0 = arith.constant 0 : i32
    %c0_i32_1 = arith.constant 0 : i32
    %c0_i32_2 = arith.constant 0 : i32
    return %c0_i32, %c0_i32_0, %c0_i32_1 : i32, i32, i32
  }
}

</mosaic_0001>

<bundles_post_ra>
// kernel: tpu_custom_call.1
= control target key start
LH: loop header
LB: loop body
LE: loop exit
PB: predicated region body
PF: predicated region fallthrough
CT: control target
= control target key end

     0   :  { %9 = vsyncpa [#allocation3], 0  ;;  %s471_s14 = smov 2   ;;  %s472_s15 = smov 1   ;;  %s605_s0 = inlined_call_operand.vmem [shape: f32[2,7,24], index: 0, kind: input, shape index: {}]   ;;  %s606_s1 = inlined_call_operand.vmem [shape: f32[2,4,7], index: 1, kind: input, shape index: {}]   ;;  %s607_s2 = inlined_call_operand.hbm [shape: f32[2,1,24], index: 2, kind: output, shape index: {0}]   ;;  %s608_s3 = inlined_call_operand.hbm [shape: s32[2,1,24], index: 3, kind: output, shape index: {1}]  }
   0x1   :  { %v507_v0 = vld [vmem:[%s606_s1] sm:$0xf] }
   0x2   :  { %39 = vrot.lane.b32.xlu0 %v507_v0, %s471_s14  ;;  %49 = vrot.lane.b32.xlu1 %v507_v0, %s472_s15 }
   0x3   :  { %10 = vsyncpa [#allocation5], 0  ;;  %v18_v1 = vld [vmem:[%s606_s1 + $0x4] sm:$0xf]  ;;  %v473_v2 = vmov 2   ;;  %s474_s18 = smov 127   ;;  %v139_v42 = vlaneseq }
   0x4   :  { %412 = vset.pattern.permute.xlu1 %v473_v2  ;;  %411 = vset.pattern.permute.xlu0 %v473_v2  ;;  %s475_s1 = smov 125   ;;  %v476_v15 = vmov 0   ;;  %v477_v20 = vmov 1   ;;  %v478_v21 = vmov 3   ;;  %v479_v22 = vmov 5   ;;  %s482_s24 = smov [#allocation4]  }
   0x5   :  { %v480_v23 = vmov 4   ;;  %v140_v45 = vshrl.u32 %v139_v42, 7  ;;  %v15_v46 = vld [vmem:[%s605_s0] sm:$0x7f]  ;;  %v16_v50 = vld [vmem:[%s605_s0 + $0x8] sm:$0x7f] }
   0x6   :  { %41 = vrot.lane.b32.xlu0 %v18_v1, %s471_s14  ;;  %51 = vrot.lane.b32.xlu1 %v18_v1, %s472_s15  ;;  %v21_v47 = vrot.slane %v15_v46, 6  ;;  %v29_v56 = vrot.slane %v15_v46, 7  ;;  %v22_v57 = vrot.slane %v16_v50, 6  ;;  %s481_s0 = smov [#allocation2]   ;;  %s383_s25 = sshll.u32 %s482_s24, 4  ;;  %s384_s25 = int_to_ptr.vmem [resolvable:$true] %s383_s25 }
   0x7   :  { %v555_v49 = vsub.s32 3, %v140_v45  ;;  %v159_v51 = vsub.s32 1, %v140_v45  ;;  %v183_v52 = vsub.s32 4, %v140_v45  ;;  %v201_v53 = vsub.s32 2, %v140_v45  ;;  %s371_s23 = sshll.u32 %s481_s0, 4  ;;  %s372_s23 = int_to_ptr.vmem [resolvable:$true] %s371_s23 }
   0x8   :  { %v25_v55 = vsub.f32 %v15_v46, %v21_v47  ;;  %v225_v63 = vsub.s32 6, %v140_v45  ;;  %s427_s26 = scalar_lea.vmem %s372_s23, 32  ;;  %p432_p1 = scmp.lt.s32.totalorder %s372_s23, %s372_s23 }
   0x9   :  { %v160_v58 = vrot.slane %v15_v46, %v159_v51  ;;  %v184_v59 = vrot.slane %v15_v46, %v183_v52  ;;  %v142_v60 = vrot.slane %v15_v46, %v555_v49  ;;  %v202_v61 = vrot.slane %v15_v46, %v201_v53  ;;  %p428_p0 = scmp.ne.s32.totalorder %s372_s23, %s427_s26  ;;  %p433_p2 = scmp.lt.s32.totalorder %s427_s26, %s427_s26 }
   0xa   :  { %v146_v62 = vrot.slane %v16_v50, %v555_v49 }
   0xb   :  { %p434_p3 = por %p433_p2, %p432_p1 }
   0xd   :  { %p435_p4 = pnand %p434_p3, %p428_p0 }
  0x74   :  { %v40_v3 = vpop.permute.xlu0 %39  ;;  %v50_v4 = vpop.permute.xlu1 %49 }
  0x75   :  { %v45_v5 = vsub.f32 %v507_v0, %v40_v3  ;;  %v55_v6 = vsub.f32 %v507_v0, %v50_v4  ;;  %v562_v3 = vadd.f32 1.0, %v25_v55  ;;  %v33_v4 = vsub.f32 %v15_v46, %v29_v56 }
  0x77   :  { %v518_v7 = vadd.f32 1.0, %v45_v5  ;;  %v57_v10 = vadd.f32 1.0, %v55_v6  ;;  %v26_v5 = vsub.f32 %v16_v50, %v22_v57  ;;  %v30_v6 = vrot.slane %v16_v50, 7 }
  0x78   :  { %v42_v8 = vpop.permute.xlu0 %41  ;;  %v52_v9 = vpop.permute.xlu1 %51  ;;  %vm95_vm12 = vcmp.eq.f32.partialorder %v562_v3, 1.0 }
  0x79   :  { %v46_v11 = vsub.f32 %v18_v1, %v42_v8  ;;  %77 = vrot.lane.b32.xlu0 %v518_v7, %s474_s18  ;;  %v56_v12 = vsub.f32 %v18_v1, %v52_v9  ;;  %vm115_vm0 = vcmp.eq.f32.partialorder %v518_v7, 1.0  ;;  %vm127_vm1 = vcmp.eq.f32.partialorder %v57_v10, 1.0 }
  0x7a   :  { %v117_v16 = vsel %vm115_vm0, 1, %v476_v15  ;;  %v129_v17 = vsel %vm127_vm1, 1, %v476_v15  ;;  %v97_v57 = vsel %vm95_vm12, 1, %v476_v15 }
  0x7b   :  { %v521_v13 = vadd.f32 1.0, %v46_v11  ;;  %v58_v14 = vadd.f32 1.0, %v56_v12  ;;  %v188_v12 = vrot.slane %v16_v50, %v183_v52 }
  0x7d   :  { %87 = vrot.lane.b32.xlu0 %v57_v10, %s475_s1  ;;  %79 = vrot.lane.b32.xlu1 %v521_v13, %s474_s18  ;;  %vm116_vm2 = vcmp.eq.f32.partialorder %v521_v13, 1.0  ;;  %vm128_vm3 = vcmp.eq.f32.partialorder %v58_v14, 1.0 }
  0x7e   :  { %v118_v18 = vsel %vm116_vm2, 1, %v476_v15  ;;  %v130_v19 = vsel %vm128_vm3, 1, %v476_v15 }
  0x81   :  { %119 = vrot.lane.b32.xlu0 %v117_v16, %s474_s18  ;;  %89 = vrot.lane.b32.xlu1 %v58_v14, %s475_s1  ;;  %v226_v14 = vrot.slane %v15_v46, %v225_v63 }
  0x85   :  { %131 = vrot.lane.b32.xlu0 %v129_v17, %s475_s1  ;;  %121 = vrot.lane.b32.xlu1 %v118_v18, %s474_s18  ;;  %v230_v18 = vrot.slane %v16_v50, %v225_v63 }
  0x89   :  { %133 = vrot.lane.b32.xlu1 %v130_v19, %s475_s1  ;;  %148 = vperm.xlu0 %411, %v507_v0   ;;  %v35_v19 = vadd.f32 1.0, %v33_v4 }
  0x8b   :  { %vm105_vm13 = vcmp.eq.f32.partialorder %v35_v19, 1.0 }
  0x8c   :  { %v107_v63 = vsel %vm105_vm13, 1, %v476_v15 }
  0x8d   :  { %152 = vperm.xlu1 %412, %v18_v1   ;;  %414 = vset.pattern.permute.xlu0 %v476_v15 }
  0x8e   :  { %170 = vperm.xlu0 %414, %v18_v1  }
  0x91   :  { %413 = vset.pattern.permute.xlu1 %v476_v15 }
  0x92   :  { %166 = vperm.xlu1 %413, %v507_v0   ;;  %416 = vset.pattern.permute.xlu0 %v477_v20 }
  0x93   :  { %208 = vperm.xlu0 %416, %v507_v0  }
  0x96   :  { %415 = vset.pattern.permute.xlu1 %v478_v21  ;;  %v565_v21 = vadd.f32 1.0, %v26_v5 }
  0x97   :  { %190 = vperm.xlu1 %415, %v507_v0   ;;  %419 = vset.pattern.permute.xlu0 %v479_v22 }
  0x98   :  { %236 = vperm.xlu0 %419, %v18_v1   ;;  %vm96_vm14 = vcmp.eq.f32.partialorder %v565_v21, 1.0 }
  0x9b   :  { %194 = vperm.xlu1 %415, %v18_v1  }
  0x9c   :  { %421 = vset.pattern.permute.xlu0 %v473_v2 }
  0x9f   :  { %417 = vset.pattern.permute.xlu1 %v477_v20  ;;  %v61_v20 = vrot.slane %v562_v3, 1 }
  0xa0   :  { %212 = vperm.xlu1 %417, %v18_v1  }
  0xa4   :  { %418 = vset.pattern.permute.xlu1 %v479_v22  ;;  %v34_v22 = vsub.f32 %v16_v50, %v30_v6 }
  0xa5   :  { %232 = vperm.xlu1 %418, %v507_v0  }
  0xa9   :  { %420 = vset.pattern.permute.xlu1 %v480_v23 }
  0xaa   :  { %250 = vperm.xlu1 %420, %v507_v0   ;;  %v164_v0 = vrot.slane %v16_v50, %v159_v51 }
  0xae   :  { %254 = vperm.xlu1 %420, %v18_v1   ;;  %v243_v1 = vsub.s32 5, %v140_v45 }
  0xb0   :  { %v244_v16 = vrot.slane %v15_v46, %v243_v1  ;;  %v248_v17 = vrot.slane %v16_v50, %v243_v1 }
  0xb2   :  { %422 = vset.pattern.permute.xlu1 %v473_v2 }
  0xeb   :  { %v78_v24 = vpop.permute.xlu0 %77 }
  0xec   :  { %v83_v25 = vmul.f32 %v78_v24, %v518_v7 }
  0xef   :  { %v80_v26 = vpop.permute.xlu1 %79  ;;  %v88_v27 = vpop.permute.xlu0 %87 }
  0xf0   :  { %v93_v28 = vmul.f32 %v88_v27, %v83_v25  ;;  %v84_v29 = vmul.f32 %v80_v26, %v521_v13  ;;  %v206_v13 = vrot.slane %v16_v50, %v201_v53 }
  0xf2   :  { %279 = vperm.xlu0 %421, %v93_v28  }
  0xf3   :  { %v90_v30 = vpop.permute.xlu1 %89  ;;  %v120_v31 = vpop.permute.xlu0 %119 }
  0xf4   :  { %v94_v32 = vmul.f32 %v90_v30, %v84_v29  ;;  %vm123_vm4 = vcmp.ne.s32.totalorder %v120_v31, 0 }
  0xf5   :  { %vm125_vm6 = vmand %vm115_vm0, %vm123_vm4 }
  0xf6   :  { %284 = vperm.xlu1 %422, %v94_v32  }
  0xf7   :  { %v122_v33 = vpop.permute.xlu1 %121  ;;  %v132_v34 = vpop.permute.xlu0 %131 }
  0xf8   :  { %vm135_vm5 = vcmp.ne.s32.totalorder %v132_v34, 0  ;;  %vm124_vm7 = vcmp.ne.s32.totalorder %v122_v33, 0  ;;  %v65_v33 = vmul.f32 %v61_v20, %v562_v3  ;;  %v69_v34 = vrot.slane %v35_v19, 3 }
  0xf9   :  { %vm137_vm8 = vmand %vm125_vm6, %vm135_vm5 }
  0xfa   :  { %v295_v36 = vsel %vm137_vm8, 1, %v476_v15  ;;  %vm126_vm9 = vmand %vm116_vm2, %vm124_vm7  ;;  %v73_v46 = vmul.f32 %v69_v34, %v65_v33 }
  0xfb   :  { %v134_v35 = vpop.permute.xlu1 %133  ;;  %298 = vperm.xlu1 %422, %v295_v36   ;;  %v62_v36 = vrot.slane %v565_v21, 1 }
  0xfc   :  { %vm136_vm10 = vcmp.ne.s32.totalorder %v134_v35, 0  ;;  %v36_v35 = vadd.f32 1.0, %v34_v22 }
  0xfd   :  { %vm138_vm11 = vmand %vm126_vm9, %vm136_vm10 }
  0xfe   :  { %v296_v37 = vsel %vm138_vm11, 1, %v476_v15  ;;  %vm106_vm15 = vcmp.eq.f32.partialorder %v36_v35, 1.0 }
  0xff   :  { %301 = vperm.xlu0 %421, %v296_v37  }
 0x104   :  { %v149_v43 = vpop.permute.xlu0 %148 }
 0x105   :  { %v155_v9 = vmin.f32 %v142_v60, %v149_v43 }
 0x108   :  { %v153_v38 = vpop.permute.xlu1 %152 }
 0x109   :  { %v171_v48 = vpop.permute.xlu0 %170  ;;  %v156_v23 = vmin.f32 %v146_v62, %v153_v38  ;;  %v99_v62 = vrot.slane %v97_v57, 1 }
 0x10a   :  { %v174_v25 = vmax.f32 %v164_v0, %v171_v48 }
 0x10b   :  { %vm101_vm0 = vcmp.ne.s32.totalorder %v99_v62, 0 }
 0x10c   :  { %vm103_vm1 = vmand %vm95_vm12, %vm101_vm0 }
 0x10d   :  { %v167_v39 = vpop.permute.xlu1 %166 }
 0x10e   :  { %v209_v2 = vpop.permute.xlu0 %208  ;;  %v173_v7 = vmax.f32 %v160_v58, %v167_v39  ;;  %v176_v39 = vsub.f32 %v156_v23, %v174_v25 }
 0x10f   :  { %v215_v11 = vmax.f32 %v202_v61, %v209_v2  ;;  %v98_v2 = vsel %vm96_vm14, 1, %v476_v15 }
 0x110   :  { %v175_v24 = vsub.f32 %v155_v9, %v173_v7  ;;  %v178_v48 = vadd.f32 1.0, %v176_v39 }
 0x112   :  { %v191_v40 = vpop.permute.xlu1 %190  ;;  %v177_v37 = vadd.f32 1.0, %v175_v24  ;;  %v180_v56 = vmax.f32 %v178_v48, 0.0 }
 0x113   :  { %v197_v8 = vmin.f32 %v184_v59, %v191_v40  ;;  %v237_v31 = vpop.permute.xlu0 %236 }
 0x114   :  { %v240_v40 = vmin.f32 %v230_v18, %v237_v31  ;;  %v179_v47 = vmax.f32 %v177_v37, 0.0 }
 0x115   :  { %v217_v26 = vsub.f32 %v197_v8, %v215_v11  ;;  %v109_v8 = vrot.slane %v107_v63, 3  ;;  %v108_v11 = vsel %vm106_vm15, 1, %v476_v15  ;;  %vm361_vm15 = vcmask 191491  }
 0x116   :  { %v550_v41 = vpop.permute.xlu1 %194 }
 0x117   :  { %v198_v27 = vmin.f32 %v188_v12, %v550_v41  ;;  %v219_v43 = vadd.f32 1.0, %v217_v26  ;;  %v66_v41 = vmul.f32 %v62_v36, %v565_v21  ;;  %vm111_vm2 = vcmp.ne.s32.totalorder %v109_v8, 0 }
 0x118   :  { %vm113_vm4 = vmand %vm103_vm1, %vm111_vm2 }
 0x119   :  { %v221_v52 = vmax.f32 %v219_v43, 0.0  ;;  %v307_v18 = vsel %vm113_vm4, 1, %v476_v15 }
 0x11a   :  { %v312_v19 = vrot.slane %v307_v18, %v555_v49 }
 0x11b   :  { %v213_v44 = vpop.permute.xlu1 %212  ;;  %v265_v60 = vmul.f32 %v221_v52, %v179_v47 }
 0x11c   :  { %v216_v28 = vmax.f32 %v206_v13, %v213_v44  ;;  %v70_v44 = vrot.slane %v36_v35, 3  ;;  %vm317_vm8 = vcmp.eq.s32.totalorder %v312_v19, 1 }
 0x11e   :  { %v218_v38 = vsub.f32 %v198_v27, %v216_v28  ;;  %v74_v55 = vmul.f32 %v70_v44, %v66_v41 }
 0x120   :  { %v233_v54 = vpop.permute.xlu1 %232  ;;  %v220_v50 = vadd.f32 1.0, %v218_v38  ;;  %v276_v1 = vrot.slane %v74_v55, %v555_v49 }
 0x121   :  { %v239_v29 = vmin.f32 %v226_v14, %v233_v54  ;;  %v272_v54 = vrot.slane %v73_v46, %v555_v49 }
 0x122   :  { %v222_v58 = vmax.f32 %v220_v50, 0.0 }
 0x124   :  { %v266_v4 = vmul.f32 %v222_v58, %v180_v56 }
 0x125   :  { %v251_v10 = vpop.permute.xlu1 %250 }
 0x126   :  { %v257_v30 = vmax.f32 %v244_v16, %v251_v10  ;;  %v100_v10 = vrot.slane %v98_v2, 1  ;;  %v110_v16 = vrot.slane %v108_v11, 3 }
 0x128   :  { %v259_v42 = vsub.f32 %v239_v29, %v257_v30  ;;  %vm102_vm3 = vcmp.ne.s32.totalorder %v100_v10, 0  ;;  %vm112_vm6 = vcmp.ne.s32.totalorder %v110_v16, 0 }
 0x129   :  { %v255_v32 = vpop.permute.xlu1 %254  ;;  %vm104_vm5 = vmand %vm96_vm14, %vm102_vm3 }
 0x12a   :  { %v258_v45 = vmax.f32 %v248_v17, %v255_v32  ;;  %v261_v51 = vadd.f32 1.0, %v259_v42  ;;  %vm114_vm7 = vmand %vm104_vm5, %vm112_vm6 }
 0x12b   :  { %v308_v20 = vsel %vm114_vm7, 1, %v476_v15 }
 0x12c   :  { %v260_v53 = vsub.f32 %v240_v40, %v258_v45  ;;  %v263_v59 = vmax.f32 %v261_v51, 0.0  ;;  %v316_v24 = vrot.slane %v308_v20, %v555_v49 }
 0x12e   :  { %v262_v61 = vadd.f32 1.0, %v260_v53  ;;  %v267_v6 = vmul.f32 %v265_v60, %v263_v59  ;;  %vm318_vm10 = vcmp.eq.s32.totalorder %v316_v24, 1 }
 0x130   :  { %v264_v5 = vmax.f32 %v262_v61, 0.0 }
 0x132   :  { %v268_v13 = vmul.f32 %v266_v4, %v264_v5 }
 0x16d   :  { %v280_v0 = vpop.permute.xlu0 %279 }
 0x16e   :  { %v287_v7 = vadd.f32 %v280_v0, %v272_v54 }
 0x170   :  { %v289_v9 = vsub.f32 %v287_v7, %v267_v6 }
 0x171   :  { %v285_v12 = vpop.permute.xlu1 %284 }
 0x172   :  { %423 = vrcp.f32 %v289_v9  ;;  %v288_v14 = vadd.f32 %v285_v12, %v276_v1 }
 0x174   :  { %v290_v17 = vsub.f32 %v288_v14, %v268_v13 }
 0x176   :  { %425 = vrcp.f32 %v290_v17  ;;  %v299_v22 = vpop.permute.xlu1 %298 }
 0x177   :  { %vm303_vm9 = vcmp.eq.s32.totalorder %v299_v22, 1 }
 0x17a   :  { %v302_v26 = vpop.permute.xlu0 %301 }
 0x17b   :  { %vm304_vm11 = vcmp.eq.s32.totalorder %v302_v26, 1 }
 0x17f   :  { %v424_v3 = vpop.eup %423 }
 0x180   :  { %v292_v23 = vmul.f32 %v424_v3, %v267_v6 }
 0x182   :  { %v305_v25 = vsel %vm303_vm9, 0.0, %v292_v23 }
 0x183   :  { %v426_v27 = vpop.eup %425  ;;  %v319_v21 = vsel %vm317_vm8, -1.0, %v305_v25 }
 0x184   :  { %v323_v28 = vrot.slane %v319_v21, 7  ;;  %v294_v29 = vmul.f32 %v426_v27, %v268_v13 }
 0x186   :  { %vm327_vm12 = vcmp.gt.f32.partialorder %v319_v21, %v323_v28  ;;  %v306_v30 = vsel %vm304_vm11, 0.0, %v294_v29 }
 0x187   :  { %v329_v31 = vsel %vm327_vm12, %v319_v21, %v323_v28  ;;  %v320_v32 = vsel %vm318_vm10, -1.0, %v306_v30  ;;  %v331_v33 = vsel %vm327_vm12, 1, %v476_v15 }
 0x188   :  { %v335_v34 = vrot.slane %v329_v31, 7  ;;  %v324_v35 = vrot.slane %v320_v32, 7  ;;  %v343_v36 = vrot.slane %v331_v33, 7 }
 0x18a   :  { %vm328_vm13 = vcmp.gt.f32.partialorder %v320_v32, %v324_v35  ;;  %vm339_vm14 = vcmp.gt.f32.partialorder %v319_v21, %v335_v34 }
 0x18b   :  { %v330_v49 = vsel %vm328_vm13, %v320_v32, %v324_v35  ;;  %v341_v37 = vsel %vm339_vm14, %v319_v21, %v335_v34  ;;  %v332_v39 = vsel %vm328_vm13, 1, %v476_v15  ;;  %v345_v40 = vsel %vm339_vm14, 2, %v343_v36 }
 0x18c   :  { %v336_v38 = vrot.slane %v330_v49, 7  ;;  %v349_v42 = vrot.slane %v341_v37, 7  ;;  %v344_v43 = vrot.slane %v332_v39, 7  ;;  %v357_v45 = vrot.slane %v345_v40, 7 }
 0x18e   :  { %vm340_vm0 = vcmp.gt.f32.partialorder %v320_v32, %v336_v38  ;;  %vm353_vm1 = vcmp.gt.f32.partialorder %v319_v21, %v349_v42 }
 0x18f   :  { %v342_v46 = vsel %vm340_vm0, %v320_v32, %v336_v38  ;;  %v355_v41 = vsel %vm353_vm1, %v319_v21, %v349_v42  ;;  %v346_v44 = vsel %vm340_vm0, 2, %v344_v43  ;;  %v359_v47 = vsel %vm353_vm1, 3, %v357_v45 }
 0x190   :  { %v350_v48 = vrot.slane %v342_v46, 7  ;;  %362 = vst.msk [vmem:[#allocation2 - $0x3] sm:$0x8] %vm361_vm15, %v355_v41  ;;  %v358_v50 = vrot.slane %v346_v44, 7  ;;  %364 = vst.msk [vmem:[#allocation4 - $0x3] sm:$0x8] %vm361_vm15, %v359_v47 }
 0x192   :  { %vm354_vm2 = vcmp.gt.f32.partialorder %v320_v32, %v350_v48 }
 0x193   :  { %v356_v15 = vsel %vm354_vm2, %v320_v32, %v350_v48  ;;  %v360_v51 = vsel %vm354_vm2, 3, %v358_v50 }
 0x194   :  { %363 = vst.msk [vmem:[#allocation2 - $0x2] sm:$0x8] %vm361_vm15, %v356_v15  ;;  %365 = vst.msk [vmem:[#allocation4 - $0x2] sm:$0x8] %vm361_vm15, %v360_v51 }
 0x195   :  { %438 = shalt.err (!%p435_p4)
}
 0x196   :  { %s483_s27 = smov 16   ;;  %s447_s30 = scalar_lea.vmem %s384_s25, 32 }
 0x197   :  { %377 = dma.vmem_to_hbm [thread:$0]  %s372_s23, 32, %s607_s2, [#allocation3], %s483_s27, %s483_s27, %s472_s15  }
 0x198   :  { %p448_p5 = scmp.ne.s32.totalorder %s384_s25, %s447_s30  ;;  %p452_p6 = scmp.lt.s32.totalorder %s384_s25, %s384_s25 }
 0x199   :  { %p453_p7 = scmp.lt.s32.totalorder %s447_s30, %s447_s30 }
 0x19b   :  { %p454_p8 = por %p453_p7, %p452_p6 }
 0x19d   :  { %p455_p9 = pnand %p454_p8, %p448_p5 }
 0x19f   :  { %458 = shalt.err (!%p455_p9)
}
 0x1a0   :  { %389 = dma.vmem_to_hbm [thread:$0]  %s384_s25, 32, %s608_s3, [#allocation5], %s483_s27, %s483_s27, %s472_s15  }
 0x1a1   :  { %467 = dma.done.wait [#allocation3], 32  }
 0x1a2   :  { %468 = vsyncadd [#allocation3], 4294967264 }
 0x1a3   :  { %469 = dma.done.wait [#allocation5], 32  }
 0x1a4   :  { %470 = vsyncadd [#allocation5], 4294967264 }
 0x1a5   :  { %396 = vsyncpa [#allocation3], 1 }
 0x1a6   :  { %397 = vsyncpa [#allocation5], 1 }

</bundles_post_ra>
